<compile_context>
chip_gen: v7x
topology: tpu7x:2x2x1
jax: 0.10.0
libtpu: 0.0.40
codegen_flags: <defaults>
</compile_context>

<pallas_src>
import functools

import jax
import jax.numpy as jnp
import numpy as np
from jax.experimental import pallas as pl
from jax.experimental.pallas import tpu as pltpu


def _round_up(x, m):
    return ((x + m - 1) // m) * m


def ce_match_kernel(x_ref, w1_ref, b1_ref, w2_ref, b2_ref, w3_ref, b3_ref,
                    out_ref, *, batch, n_valid, tile_rows, compute_dtype):
    """One row tile: fused MLP -> logit-difference CE + accuracy partial sums."""
    i = pl.program_id(0)

    # Cast the streamed tile in-kernel (no wrapper-side cast pass over HBM).
    x = x_ref[...].astype(compute_dtype)                  # [T, 2D]

    # Linear(2D -> Dp) with eval-mode BN folded into weights/bias, then ReLU.
    h = jnp.dot(x, w1_ref[...], preferred_element_type=jnp.float32) + b1_ref[...]
    h = jnp.maximum(h, 0.0)

    # Linear(Dp -> Dhp) with folded BN, then ReLU.  (Dropout = identity, eval.)
    h = h.astype(compute_dtype)
    h = jnp.dot(h, w2_ref[...], preferred_element_type=jnp.float32) + b2_ref[...]
    h = jnp.maximum(h, 0.0)                               # [T, Dhp] f32

    # Logit-difference head, lane-dense: d[0, t] = sum_j h[t, j] * w3d[j].
    # dot_general with the rhs contracting on its last dim (the q @ k.T
    # pattern) puts the T rows on the lane axis, so the whole CE / accuracy
    # epilogue runs on ~T/128 dense vregs instead of T/8 sparse [T, 1] vregs.
    d = jax.lax.dot_general(w3_ref[...], h, (((1,), (1,)), ((), ())),
                            preferred_element_type=jnp.float32)       # [1, T]
    d = d + b3_ref[0]

    # Global row index of each column.  Labels: 1 for the first `batch` rows
    # of the whole input, 0 for the remaining 2*batch rows.
    col = jax.lax.broadcasted_iota(jnp.int32, (1, tile_rows), 1)
    row = col + i * tile_rows
    valid = row < n_valid              # mask the ragged last tile
    is_pos = row < batch

    # Softmax cross-entropy via numerically stable softplus of +/- d.
    z = jnp.where(is_pos, -d, d)
    ce_i = jnp.maximum(z, 0.0) + jnp.log(1.0 + jnp.exp(-jnp.abs(z)))

    # torch.max ties resolve to index 0, so predicted class 1 only if d > 0.
    correct = (d > 0.0) == is_pos

    ce_sum = jnp.sum(jnp.where(valid, ce_i, 0.0))
    n_corr = jnp.sum(jnp.where(jnp.logical_and(valid, correct), 1.0, 0.0))

    # Lane-dense partial-sum tile: [1, 8, 128] with the two scalars at
    # [0, 0, 0] / [0, 0, 1]; the tiny final reduction happens outside.
    lane = jax.lax.broadcasted_iota(jnp.int32, (1, 8, 128), 2)
    sub = jax.lax.broadcasted_iota(jnp.int32, (1, 8, 128), 1)
    vals = jnp.where(lane == 0, ce_sum, jnp.where(lane == 1, n_corr, 0.0))
    out_ref[...] = jnp.where(sub == 0, vals, 0.0)


def ce_matching_loss(final_input, params, batch, *, tile_rows=512,
                     compute_dtype=jnp.bfloat16):
    """Returns (ce_loss, accuracy) for the concatenated [3B, 2D] input.

    bf16 streaming (default) is the production path; compute_dtype=f32 is for
    parity testing against the exact eval-mode math.
    """
    (w1, b1, s1, t1, w2, b2, s2, t2, w3, b3) = params

    n, two_d = final_input.shape
    d_out1 = w1.shape[1]              # D
    d_out2 = w2.shape[1]              # D // 2

    # Fold the eval-mode BN affine into the Linear weights (one-time, host).
    w1f = w1 * s1                                        # [2D, D]
    b1f = b1 * s1 + t1                                   # [1, D]
    w2f = w2 * s2                                        # [D, D/2]
    b2f = b2 * s2 + t2                                   # [1, D/2]
    w3d = (w3[:, 1] - w3[:, 0]).reshape(1, -1)           # [1, D/2]
    b3d = (b3[0, 1] - b3[0, 0]).reshape(1)               # [1]

    # Pad hidden (output-column) dims up to multiples of 128 with zeros so
    # both matmuls write full lanes / full MXU columns.  Exact: padded columns
    # stay 0 through bias-add + ReLU and meet zero rows / a zero head weight.
    d1p = _round_up(d_out1, 128)
    d2p = _round_up(d_out2, 128)
    if d1p != d_out1:
        w1f = jnp.pad(w1f, ((0, 0), (0, d1p - d_out1)))
        b1f = jnp.pad(b1f, ((0, 0), (0, d1p - d_out1)))
        w2f = jnp.pad(w2f, ((0, d1p - d_out1), (0, 0)))
    if d2p != d_out2:
        w2f = jnp.pad(w2f, ((0, 0), (0, d2p - d_out2)))
        b2f = jnp.pad(b2f, ((0, 0), (0, d2p - d_out2)))
        w3d = jnp.pad(w3d, ((0, 0), (0, d2p - d_out2)))

    w1f = w1f.astype(compute_dtype)
    w2f = w2f.astype(compute_dtype)
    b1f = b1f.astype(jnp.float32)
    b2f = b2f.astype(jnp.float32)
    w3d = w3d.astype(jnp.float32)
    b3d = b3d.astype(jnp.float32)

    # Row tile: big enough to amortize the ~0.35 us per-grid-step overhead and
    # keep the MXU full (multiple of 256 for v6e/v7x, 128 for v5e).  No
    # host-side pad of the [3B, 2D] input; the ragged last tile is masked.
    tile_rows = min(tile_rows, _round_up(n, 8))
    num_tiles = pl.cdiv(n, tile_rows)

    in_item = jnp.dtype(final_input.dtype).itemsize
    c_item = jnp.dtype(compute_dtype).itemsize

    # VMEM budget: double-buffered streamed input + single-copy resident
    # weights (whole-array VMEM operands are not pipelined/double-buffered)
    # + f32 activations + headroom; capped below per-core physical capacity
    # (v7x: 64 MiB/TC -> ~54 MiB; v5e/v6e: 128 MiB -> ~108 MiB).
    est = (2 * tile_rows * two_d * in_item
           + (w1f.size + w2f.size) * c_item
           + (b1f.size + b2f.size + w3d.size) * 4
           + 2 * 8 * 128 * 4
           + 2 * tile_rows * (d1p + d2p) * 4
           + tile_rows * two_d * c_item
           + (8 << 20))
    try:
        vmem_cap = int(getattr(pltpu.get_tpu_info(), "vmem_capacity_bytes",
                               64 << 20))
    except Exception:  # pragma: no cover - conservative fallback
        vmem_cap = 64 << 20
    vmem_bytes = int(min(max(est, 32 << 20), int(vmem_cap * 0.85)))

    flops = 2 * n * (two_d * d1p + d1p * d2p + d2p)
    bytes_accessed = (n * two_d * in_item
                      + (w1f.size + w2f.size) * c_item
                      + (b1f.size + b2f.size + w3d.size + 1) * 4
                      + num_tiles * 8 * 128 * 4)
    cost = pl.CostEstimate(flops=int(flops), transcendentals=int(2 * n),
                           bytes_accessed=int(bytes_accessed))

    kernel = functools.partial(ce_match_kernel, batch=batch, n_valid=n,
                               tile_rows=tile_rows, compute_dtype=compute_dtype)

    resident = pl.BlockSpec(memory_space=pltpu.MemorySpace.VMEM)  # 1 copy, no 2x buffering

    partials = pl.pallas_call(
        kernel,
        out_shape=jax.ShapeDtypeStruct((num_tiles, 8, 128), jnp.float32),
        grid=(num_tiles,),
        in_specs=[
            pl.BlockSpec((tile_rows, two_d), lambda i: (i, 0)),  # streamed rows
            resident,                                            # w1f
            resident,                                            # b1f
            resident,                                            # w2f
            resident,                                            # b2f
            resident,                                            # w3d
            pl.BlockSpec(memory_space=pltpu.MemorySpace.SMEM),   # b3 scalar
        ],
        out_specs=pl.BlockSpec((1, 8, 128), lambda i: (i, 0, 0)),
        compiler_params=pltpu.CompilerParams(
            dimension_semantics=("parallel",),   # v7x: both TCs split the tiles
            vmem_limit_bytes=vmem_bytes),
        cost_estimate=cost,
    )(final_input, w1f, b1f, w2f, b2f, w3d, b3d)

    ce_loss = jnp.sum(partials[:, 0, 0]) / n
    acc = jnp.sum(partials[:, 0, 1]) / n
    return ce_loss, acc


def make_params(key, input_dim):
    """Deterministic init matching the module shapes (kaiming normal, bias=0.01,
    BN with running mean=0, var=1, gamma=1, beta=0, eps=1e-3)."""
    d = input_dim
    eps = 0.001
    k1, k2, k3 = jax.random.split(key, 3)

    def kaiming(k, fan_in, shape):
        return (jax.random.normal(k, shape, jnp.float32)
                * np.sqrt(2.0 / fan_in)).astype(jnp.float32)

    w1 = kaiming(k1, 2 * d, (2 * d, d))          # Linear(2D, D), stored [in, out]
    b1 = jnp.full((1, d), 0.01, jnp.float32)
    s1 = jnp.full((1, d), 1.0 / np.sqrt(1.0 + eps), jnp.float32)   # BN scale
    t1 = jnp.zeros((1, d), jnp.float32)                            # BN shift

    w2 = kaiming(k2, d, (d, d // 2))             # Linear(D, D/2)
    b2 = jnp.full((1, d // 2), 0.01, jnp.float32)
    s2 = jnp.full((1, d // 2), 1.0 / np.sqrt(1.0 + eps), jnp.float32)
    t2 = jnp.zeros((1, d // 2), jnp.float32)

    w3 = kaiming(k3, d // 2, (d // 2, 2))        # Linear(D/2, 2)
    b3 = jnp.full((1, 2), 0.01, jnp.float32)

    return (w1, b1, s1, t1, w2, b2, s2, t2, w3, b3)


def reference_exact(final_input, params, batch):
    """Pure-JAX f32 forward matching the original PyTorch eval-mode math."""
    (w1, b1, s1, t1, w2, b2, s2, t2, w3, b3) = params
    h = jnp.maximum((final_input @ w1 + b1) * s1 + t1, 0.0)
    h = jnp.maximum((h @ w2 + b2) * s2 + t2, 0.0)
    logits = h @ w3 + b3
    n = final_input.shape[0]
    labels = jnp.concatenate(
        [jnp.ones((batch,), jnp.int32), jnp.zeros((2 * batch,), jnp.int32)])
    lse = jax.nn.logsumexp(logits, axis=1)
    ce = jnp.mean(lse - logits[jnp.arange(n), labels])
    preds = (logits[:, 1] > logits[:, 0]).astype(jnp.int32)
    acc = jnp.mean((preds == labels).astype(jnp.float32))
    return ce, acc


def reference_folded(final_input, params, batch, compute_dtype):
    """Pure-JAX reference mirroring the kernel's fold + cast path."""
    (w1, b1, s1, t1, w2, b2, s2, t2, w3, b3) = params
    w1f = (w1 * s1).astype(compute_dtype)
    b1f = b1 * s1 + t1
    w2f = (w2 * s2).astype(compute_dtype)
    b2f = b2 * s2 + t2
    w3d = w3[:, 1] - w3[:, 0]
    b3d = b3[0, 1] - b3[0, 0]
    x = final_input.astype(compute_dtype)
    h = jnp.maximum(jnp.dot(x, w1f, preferred_element_type=jnp.float32) + b1f, 0.0)
    h = h.astype(compute_dtype)
    h = jnp.maximum(jnp.dot(h, w2f, preferred_element_type=jnp.float32) + b2f, 0.0)
    d = jnp.sum(h * w3d[None, :], axis=-1) + b3d
    n = final_input.shape[0]
    is_pos = jnp.arange(n) < batch
    z = jnp.where(is_pos, -d, d)
    ce = jnp.mean(jnp.maximum(z, 0.0) + jnp.log(1.0 + jnp.exp(-jnp.abs(z))))
    correct = (d > 0.0) == is_pos
    acc = jnp.mean(correct.astype(jnp.float32))
    return ce, acc


if __name__ == "__main__":
    B = 4            # batch_num
    D = 64           # input_dim (audio/video feature dim; small for test)

    key = jax.random.PRNGKey(0)
    kx, ky, knx, kny, kp = jax.random.split(key, 5)
    x_embed = jax.random.normal(kx, (B, D), jnp.float32)
    y_embed = jax.random.normal(ky, (B, D), jnp.float32)
    n_x_embed = jax.random.normal(knx, (B, D), jnp.float32)
    n_y_embed = jax.random.normal(kny, (B, D), jnp.float32)

    params = make_params(kp, D)

    # Glue: build the concatenated [3B, 2D] input (same as the torch forward).
    x_new = jnp.concatenate([x_embed, x_embed, n_x_embed], axis=0)
    y_new = jnp.concatenate([y_embed, n_y_embed, y_embed], axis=0)
    final_input = jnp.concatenate([x_new, y_new], axis=1)

    # 1) f32 path: tight check against the original eval-mode math.
    ce32, acc32 = ce_matching_loss(final_input, params, B,
                                   compute_dtype=jnp.float32)
    jax.block_until_ready((ce32, acc32))
    ce_ref, acc_ref = reference_exact(final_input, params, B)
    assert np.allclose(np.asarray(ce32), np.asarray(ce_ref), rtol=1e-4, atol=1e-4)
    assert np.allclose(np.asarray(acc32), np.asarray(acc_ref), rtol=1e-4, atol=1e-4)

    # 2) bf16 streaming path (default): check against a bf16-consistent ref.
    ce_bf, acc_bf = ce_matching_loss(final_input, params, B)
    jax.block_until_ready((ce_bf, acc_bf))
    ce_rbf, acc_rbf = reference_folded(final_input, params, B, jnp.bfloat16)
    assert np.allclose(np.asarray(ce_bf), np.asarray(ce_rbf), rtol=5e-3, atol=5e-3)
    assert np.allclose(np.asarray(acc_bf), np.asarray(acc_rbf), rtol=1e-6, atol=1e-6)
    # Sanity: bf16 result stays close to the full-f32 reference.
    assert abs(float(ce_bf) - float(ce_ref)) < 0.1

    print("KERNEL_OK")
</pallas_src>

<mosaic_0001>
module attributes {stable_mosaic.version = 11 : i64} {
  func.func @ce_match_kernel(%arg0: i32, %arg1: memref<16x128xf32, #tpu.memory_space<vmem>>, %arg2: memref<128x128xf32, #tpu.memory_space<vmem>>, %arg3: memref<1x128xf32, #tpu.memory_space<vmem>>, %arg4: memref<128x128xf32, #tpu.memory_space<vmem>>, %arg5: memref<1x128xf32, #tpu.memory_space<vmem>>, %arg6: memref<1x128xf32, #tpu.memory_space<vmem>>, %arg7: memref<1xf32, #tpu.memory_space<smem>>, %arg8: memref<1x8x128xf32, #tpu.memory_space<vmem>>) attributes {dimension_semantics = [#tpu.dimension_semantics<parallel>], iteration_bounds = array<i64: 1>, scalar_prefetch = 0 : i64, scratch_operands = 0 : i64, tpu.core_type = #tpu.core_type<tc>, window_params = [{transform_indices = @transform_0, window_bounds = array<i64: 16, 128>}, {pipeline_mode = #tpu.pipeline_mode<synchronous>, transform_indices = @transform_1, window_bounds = array<i64: 128, 128>}, {pipeline_mode = #tpu.pipeline_mode<synchronous>, transform_indices = @transform_2, window_bounds = array<i64: 1, 128>}, {pipeline_mode = #tpu.pipeline_mode<synchronous>, transform_indices = @transform_3, window_bounds = array<i64: 128, 128>}, {pipeline_mode = #tpu.pipeline_mode<synchronous>, transform_indices = @transform_4, window_bounds = array<i64: 1, 128>}, {pipeline_mode = #tpu.pipeline_mode<synchronous>, transform_indices = @transform_5, window_bounds = array<i64: 1, 128>}, {transform_indices = @transform_6, window_bounds = array<i64: 1>}, {transform_indices = @transform_7, window_bounds = array<i64: 1, 8, 128>}]} {
    %c0 = arith.constant 0 : index
    %c0_0 = arith.constant 0 : index
    %0 = vector.load %arg1[%c0, %c0_0] : memref<16x128xf32, #tpu.memory_space<vmem>>, vector<16x128xf32>
    %c0_1 = arith.constant 0 : index
    %c0_2 = arith.constant 0 : index
    %1 = vector.load %arg2[%c0_1, %c0_2] : memref<128x128xf32, #tpu.memory_space<vmem>>, vector<128x128xf32>
    %cst = arith.constant dense<0.000000e+00> : vector<16x128xf32>
    %2 = tpu.matmul %0, %1, %cst {dimension_numbers = #tpu.dot_dimension_numbers<[1], [0], [0], [1], [0, 0, 1, 1], [], []>} : vector<16x128xf32>, vector<128x128xf32>, vector<16x128xf32> -> vector<16x128xf32>
    %c0_3 = arith.constant 0 : index
    %c0_4 = arith.constant 0 : index
    %3 = vector.load %arg3[%c0_3, %c0_4] : memref<1x128xf32, #tpu.memory_space<vmem>>, vector<1x128xf32>
    %4 = vector.broadcast %3 : vector<1x128xf32> to vector<16x128xf32>
    %5 = arith.addf %2, %4 : vector<16x128xf32>
    %cst_5 = arith.constant 0.000000e+00 : f32
    %6 = vector.broadcast %cst_5 : f32 to vector<16x128xf32>
    %7 = arith.maximumf %5, %6 : vector<16x128xf32>
    %c0_6 = arith.constant 0 : index
    %c0_7 = arith.constant 0 : index
    %8 = vector.load %arg4[%c0_6, %c0_7] : memref<128x128xf32, #tpu.memory_space<vmem>>, vector<128x128xf32>
    %cst_8 = arith.constant dense<0.000000e+00> : vector<16x128xf32>
    %9 = tpu.matmul %7, %8, %cst_8 {dimension_numbers = #tpu.dot_dimension_numbers<[1], [0], [0], [1], [0, 0, 1, 1], [], []>} : vector<16x128xf32>, vector<128x128xf32>, vector<16x128xf32> -> vector<16x128xf32>
    %c0_9 = arith.constant 0 : index
    %c0_10 = arith.constant 0 : index
    %10 = vector.load %arg5[%c0_9, %c0_10] : memref<1x128xf32, #tpu.memory_space<vmem>>, vector<1x128xf32>
    %11 = vector.broadcast %10 : vector<1x128xf32> to vector<16x128xf32>
    %12 = arith.addf %9, %11 : vector<16x128xf32>
    %cst_11 = arith.constant 0.000000e+00 : f32
    %13 = vector.broadcast %cst_11 : f32 to vector<16x128xf32>
    %14 = arith.maximumf %12, %13 : vector<16x128xf32>
    %c0_12 = arith.constant 0 : index
    %c0_13 = arith.constant 0 : index
    %15 = vector.load %arg6[%c0_12, %c0_13] : memref<1x128xf32, #tpu.memory_space<vmem>>, vector<1x128xf32>
    %cst_14 = arith.constant dense<0.000000e+00> : vector<1x16xf32>
    %16 = tpu.matmul %15, %14, %cst_14 {dimension_numbers = #tpu.dot_dimension_numbers<[1], [1], [0], [0], [0, 0, 1, 0], [], []>} : vector<1x128xf32>, vector<16x128xf32>, vector<1x16xf32> -> vector<1x16xf32>
    %c0_15 = arith.constant 0 : index
    %17 = memref.load %arg7[%c0_15] : memref<1xf32, #tpu.memory_space<smem>>
    %18 = vector.broadcast %17 : f32 to vector<1x16xf32>
    %19 = arith.addf %16, %18 : vector<1x16xf32>
    %20 = tpu.iota {dimensions = array<i32: 1>} : vector<1x16xi32>
    %c16_i32 = arith.constant 16 : i32
    %21 = arith.muli %arg0, %c16_i32 : i32
    %22 = vector.broadcast %21 : i32 to vector<1x16xi32>
    %23 = arith.addi %20, %22 : vector<1x16xi32>
    %c12_i32 = arith.constant 12 : i32
    %24 = vector.broadcast %c12_i32 : i32 to vector<1x16xi32>
    %25 = arith.cmpi slt, %23, %24 : vector<1x16xi32>
    %c4_i32 = arith.constant 4 : i32
    %26 = vector.broadcast %c4_i32 : i32 to vector<1x16xi32>
    %27 = arith.cmpi slt, %23, %26 : vector<1x16xi32>
    %cst_16 = arith.constant 0.000000e+00 : f32
    %28 = vector.broadcast %cst_16 : f32 to vector<1x16xf32>
    %29 = arith.subf %28, %19 : vector<1x16xf32>
    %30 = arith.select %27, %29, %19 : vector<1x16xi1>, vector<1x16xf32>
    %cst_17 = arith.constant 0.000000e+00 : f32
    %31 = vector.broadcast %cst_17 : f32 to vector<1x16xf32>
    %32 = arith.maximumf %30, %31 : vector<1x16xf32>
    %33 = math.absf %30 : vector<1x16xf32>
    %cst_18 = arith.constant 0.000000e+00 : f32
    %34 = vector.broadcast %cst_18 : f32 to vector<1x16xf32>
    %35 = arith.subf %34, %33 : vector<1x16xf32>
    %36 = math.exp %35 : vector<1x16xf32>
    %cst_19 = arith.constant 1.000000e+00 : f32
    %37 = vector.broadcast %cst_19 : f32 to vector<1x16xf32>
    %38 = arith.addf %37, %36 : vector<1x16xf32>
    %39 = math.log %38 : vector<1x16xf32>
    %40 = arith.addf %32, %39 : vector<1x16xf32>
    %cst_20 = arith.constant 0.000000e+00 : f32
    %41 = vector.broadcast %cst_20 : f32 to vector<1x16xf32>
    %42 = arith.cmpf ogt, %19, %41 : vector<1x16xf32>
    %43 = arith.xori %42, %27 : vector<1x16xi1>
    %cst_21 = arith.constant dense<true> : vector<1x16xi1>
    %44 = arith.xori %43, %cst_21 : vector<1x16xi1>
    %cst_22 = arith.constant 0.000000e+00 : f32
    %45 = vector.broadcast %cst_22 : f32 to vector<1x16xf32>
    %46 = arith.select %25, %40, %45 : vector<1x16xi1>, vector<1x16xf32>
    %47 = vector.shape_cast %46 : vector<1x16xf32> to vector<1x1x16xf32>
    %cst_23 = arith.constant dense<0.000000e+00> : vector<1xf32>
    %48 = vector.multi_reduction <add>, %47, %cst_23 [1, 2] : vector<1x1x16xf32> to vector<1xf32>
    %49 = vector.shape_cast %48 : vector<1xf32> to vector<1x1x1xf32>
    %50 = vector.extract %49[0, 0, 0] : f32 from vector<1x1x1xf32>
    %51 = arith.andi %25, %44 : vector<1x16xi1>
    %cst_24 = arith.constant 1.000000e+00 : f32
    %cst_25 = arith.constant 0.000000e+00 : f32
    %52 = vector.broadcast %cst_24 : f32 to vector<1x16xf32>
    %53 = vector.broadcast %cst_25 : f32 to vector<1x16xf32>
    %54 = arith.select %51, %52, %53 : vector<1x16xi1>, vector<1x16xf32>
    %55 = vector.shape_cast %54 : vector<1x16xf32> to vector<1x1x16xf32>
    %cst_26 = arith.constant dense<0.000000e+00> : vector<1xf32>
    %56 = vector.multi_reduction <add>, %55, %cst_26 [1, 2] : vector<1x1x16xf32> to vector<1xf32>
    %57 = vector.shape_cast %56 : vector<1xf32> to vector<1x1x1xf32>
    %58 = vector.extract %57[0, 0, 0] : f32 from vector<1x1x1xf32>
    %59 = tpu.iota {dimensions = array<i32: 2>} : vector<1x8x128xi32>
    %60 = tpu.iota {dimensions = array<i32: 1>} : vector<1x8x128xi32>
    %c0_i32 = arith.constant 0 : i32
    %61 = vector.broadcast %c0_i32 : i32 to vector<1x8x128xi32>
    %62 = arith.cmpi eq, %59, %61 : vector<1x8x128xi32>
    %c1_i32 = arith.constant 1 : i32
    %63 = vector.broadcast %c1_i32 : i32 to vector<1x8x128xi32>
    %64 = arith.cmpi eq, %59, %63 : vector<1x8x128xi32>
    %cst_27 = arith.constant 0.000000e+00 : f32
    %65 = vector.broadcast %58 : f32 to vector<1x8x128xf32>
    %66 = vector.broadcast %cst_27 : f32 to vector<1x8x128xf32>
    %67 = arith.select %64, %65, %66 : vector<1x8x128xi1>, vector<1x8x128xf32>
    %68 = vector.broadcast %50 : f32 to vector<1x8x128xf32>
    %69 = arith.select %62, %68, %67 : vector<1x8x128xi1>, vector<1x8x128xf32>
    %c0_i32_28 = arith.constant 0 : i32
    %70 = vector.broadcast %c0_i32_28 : i32 to vector<1x8x128xi32>
    %71 = arith.cmpi eq, %60, %70 : vector<1x8x128xi32>
    %cst_29 = arith.constant 0.000000e+00 : f32
    %72 = vector.broadcast %cst_29 : f32 to vector<1x8x128xf32>
    %73 = arith.select %71, %69, %72 : vector<1x8x128xi1>, vector<1x8x128xf32>
    %c0_30 = arith.constant 0 : index
    %c0_31 = arith.constant 0 : index
    %c0_32 = arith.constant 0 : index
    %74 = vector.load %arg8[%c0_30, %c0_31, %c0_32] : memref<1x8x128xf32, #tpu.memory_space<vmem>>, vector<1x8x128xf32>
    tpu.vector_store %arg8[%c0_30, %c0_31, %c0_32], %73 {strides = array<i32>} : memref<1x8x128xf32, #tpu.memory_space<vmem>>, vector<1x8x128xf32>,
    return
  }
  func.func @transform_0(%arg0: i32) -> (i32, i32) {
    %c0_i32 = arith.constant 0 : i32
    %c0_i32_0 = arith.constant 0 : i32
    return %arg0, %c0_i32 : i32, i32
  }
  func.func @transform_1(%arg0: i32) -> (i32, i32) {
    %c0_i32 = arith.constant 0 : i32
    %c0_i32_0 = arith.constant 0 : i32
    %c0_i32_1 = arith.constant 0 : i32
    return %c0_i32, %c0_i32_0 : i32, i32
  }
  func.func @transform_2(%arg0: i32) -> (i32, i32) {
    %c0_i32 = arith.constant 0 : i32
    %c0_i32_0 = arith.constant 0 : i32
    %c0_i32_1 = arith.constant 0 : i32
    return %c0_i32, %c0_i32_0 : i32, i32
  }
  func.func @transform_3(%arg0: i32) -> (i32, i32) {
    %c0_i32 = arith.constant 0 : i32
    %c0_i32_0 = arith.constant 0 : i32
    %c0_i32_1 = arith.constant 0 : i32
    return %c0_i32, %c0_i32_0 : i32, i32
  }
  func.func @transform_4(%arg0: i32) -> (i32, i32) {
    %c0_i32 = arith.constant 0 : i32
    %c0_i32_0 = arith.constant 0 : i32
    %c0_i32_1 = arith.constant 0 : i32
    return %c0_i32, %c0_i32_0 : i32, i32
  }
  func.func @transform_5(%arg0: i32) -> (i32, i32) {
    %c0_i32 = arith.constant 0 : i32
    %c0_i32_0 = arith.constant 0 : i32
    %c0_i32_1 = arith.constant 0 : i32
    return %c0_i32, %c0_i32_0 : i32, i32
  }
  func.func @transform_6(%arg0: i32) -> i32 {
    %c0_i32 = arith.constant 0 : i32
    %c0_i32_0 = arith.constant 0 : i32
    return %c0_i32 : i32
  }
  func.func @transform_7(%arg0: i32) -> (i32, i32, i32) {
    %c0_i32 = arith.constant 0 : i32
    %c0_i32_0 = arith.constant 0 : i32
    %c0_i32_1 = arith.constant 0 : i32
    return %arg0, %c0_i32, %c0_i32_0 : i32, i32, i32
  }
}

</mosaic_0001>

<bundles_post_ra>
// kernel: tpu_custom_call.1
= control target key start
LH: loop header
LB: loop body
LE: loop exit
PB: predicated region body
PF: predicated region fallthrough
CT: control target
= control target key end

     0   :  { %13 = vsyncpa [#allocation4], 0  ;;  %s839_s0 = inlined_call_operand.hbm [shape: f32[12,128], index: 0, kind: input, shape index: {}]   ;;  %s840_s1 = inlined_call_operand.hbm [shape: f32[128,128], index: 1, kind: input, shape index: {}]   ;;  %s841_s2 = inlined_call_operand.vmem [shape: f32[1,128], index: 2, kind: input, shape index: {}]   ;;  %s842_s3 = inlined_call_operand.hbm [shape: f32[128,128], index: 3, kind: input, shape index: {}]   ;;  %s843_s4 = inlined_call_operand.vmem [shape: f32[1,128], index: 4, kind: input, shape index: {}]   ;;  %s844_s5 = inlined_call_operand.vmem [shape: f32[1,128], index: 5, kind: input, shape index: {}]   ;;  %s845_s6 = inlined_call_operand.<no memory space> [shape: f32[1], index: 6, kind: input, shape index: {}]   ;;  %s846_s7 = inlined_call_operand.hbm [shape: f32[1,8,128], index: 7, kind: output, shape index: {}]  }
   0x1   :  { %14 = vsyncpa [#allocation7], 0 }
   0x2   :  { %15 = vsyncpa [#allocation5], 0  ;;  %s713_s24 = smov [#allocation6]   ;;  %s714_s26 = smov [#allocation3]  }
   0x3   :  { %s33_s25 = sshll.u32 %s713_s24, 4  ;;  %s21_s27 = sshll.u32 %s714_s26, 4  ;;  %s34_s25 = int_to_ptr.vmem [resolvable:$true] %s33_s25  ;;  %s763_s27 = int_to_ptr.vmem [resolvable:$true] %s21_s27 }
   0x4   :  { %s619_s30 = scalar_lea.hbm %s840_s1, 2048 }
   0x5   :  { %p620_p0 = scmp.ne.s32.totalorder %s840_s1, %s619_s30  ;;  %p623_p1 = scmp.lt.u32.totalorder %s619_s30, %s840_s1 }
   0x7   :  { %p625_p2 = pnand %p623_p1, %p620_p0 }
   0x9   :  { %628 = shalt.err (!%p625_p2)
}
   0xa   :  { %s629_s12 = scalar_lea.vmem %s34_s25, 2048  ;;  %p634_p4 = scmp.lt.s32.totalorder %s34_s25, %s34_s25 }
   0xb   :  { %p630_p3 = scmp.ne.s32.totalorder %s34_s25, %s629_s12  ;;  %p635_p5 = scmp.lt.s32.totalorder %s629_s12, %s629_s12 }
   0xd   :  { %p636_p6 = por %p635_p5, %p634_p4 }
   0xf   :  { %p637_p7 = pnand %p636_p6, %p630_p3 }
  0x11   :  { %640 = shalt.err (!%p637_p7)
}
  0x12   :  { %s715_s13 = smov 128   ;;  %s716_s14 = smov 8  }
  0x13   :  { %39 = dma.hbm_to_vmem [thread:$0]  %s840_s1, 2048, %s34_s25, [#allocation7], %s715_s13, %s715_s13, %s716_s14  }
  0x14   :  { %s641_s19 = scalar_lea.hbm %s839_s0, 256 }
  0x15   :  { %p642_p8 = scmp.ne.s32.totalorder %s839_s0, %s641_s19  ;;  %p645_p9 = scmp.lt.u32.totalorder %s641_s19, %s839_s0 }
  0x17   :  { %p647_p10 = pnand %p645_p9, %p642_p8 }
  0x19   :  { %650 = shalt.err (!%p647_p10)
}
  0x1a   :  { %s651_s24 = scalar_lea.vmem %s763_s27, 256  ;;  %p656_p12 = scmp.lt.s32.totalorder %s763_s27, %s763_s27 }
  0x1b   :  { %p652_p11 = scmp.ne.s32.totalorder %s763_s27, %s651_s24  ;;  %p657_p13 = scmp.lt.s32.totalorder %s651_s24, %s651_s24 }
  0x1d   :  { %p658_p0 = por %p657_p13, %p656_p12 }
  0x1f   :  { %p659_p1 = pnand %p658_p0, %p652_p11 }
  0x21   :  { %662 = shalt.err (!%p659_p1)
}
  0x22   :  { %27 = dma.hbm_to_vmem [thread:$0]  %s839_s0, 256, %s763_s27, [#allocation4], %s715_s13, %s715_s13, %s716_s14  }
  0x23   :  { %s717_s26 = smov [#allocation8]   ;;  %s663_s8 = scalar_lea.hbm %s842_s3, 2048 }
  0x24   :  { %s47_s28 = sshll.u32 %s717_s26, 4  ;;  %p664_p2 = scmp.ne.s32.totalorder %s842_s3, %s663_s8  ;;  %s48_s28 = int_to_ptr.vmem [resolvable:$true] %s47_s28 }
  0x25   :  { %p667_p3 = scmp.lt.u32.totalorder %s663_s8, %s842_s3 }
  0x27   :  { %p669_p4 = pnand %p667_p3, %p664_p2 }
  0x29   :  { %672 = shalt.err (!%p669_p4)
}
  0x2a   :  { %s673_s15 = scalar_lea.vmem %s48_s28, 2048  ;;  %p678_p6 = scmp.lt.s32.totalorder %s48_s28, %s48_s28 }
  0x2b   :  { %p674_p5 = scmp.ne.s32.totalorder %s48_s28, %s673_s15  ;;  %p679_p7 = scmp.lt.s32.totalorder %s673_s15, %s673_s15 }
  0x2d   :  { %p680_p8 = por %p679_p7, %p678_p6 }
  0x2f   :  { %p681_p9 = pnand %p680_p8, %p674_p5 }
  0x31   :  { %684 = shalt.err (!%p681_p9)
}
  0x32   :  { %53 = dma.hbm_to_vmem [thread:$0]  %s842_s3, 2048, %s48_s28, [#allocation7], %s715_s13, %s715_s13, %s716_s14  }
  0x33   :  { %707 = dma.done.wait [#allocation4], 256  }
  0x34   :  { %708 = vsyncadd [#allocation4], 4294967040 }
  0x35   :  { %709 = dma.done.wait [#allocation7], 4096  }
  0x36   :  { %710 = vsyncadd [#allocation7], 4294963200  ;;  %v71_v0 = vld [vmem:[#allocation6] sm:$0xff]  ;;  %v72_v1 = vld [vmem:[#allocation6 + $0x8] sm:$0xff]  ;;  %v718_v57 = vmov 0.0|0.0   ;;  %vm719_vm0 = vmmov 0  }
  0x37   :  { %v73_v2 = vld [vmem:[#allocation6 + $0x10] sm:$0xff]  ;;  %v534_v3 = vpack.c.bf16 %v72_v1, %v71_v0  ;;  %v74_v4 = vld [vmem:[#allocation6 + $0x18] sm:$0xff]  ;;  %v75_v6 = vld [vmem:[#allocation6 + $0x20] sm:$0xff]  ;;  %v720_v58 = vmov 0.0   ;;  %vm721_vm5 = vmmov 1   ;;  %vm366_vm8 = vcmask 122880  }
  0x38   :  { %v538_v5 = vpack.c.bf16 %v74_v4, %v73_v2  ;;  %v76_v7 = vld [vmem:[#allocation6 + $0x28] sm:$0xff]  ;;  %v77_v9 = vld [vmem:[#allocation6 + $0x30] sm:$0xff]  ;;  %v78_v10 = vld [vmem:[#allocation6 + $0x38] sm:$0xff]  ;;  %v344_v4 = vlaneseq }
  0x39   :  { %535 = vmatprep.subr.bf16.mxu0 %v534_v3  ;;  %v542_v8 = vpack.c.bf16 %v76_v7, %v75_v6  ;;  %v69_v11 = vld [vmem:[#allocation3] sm:$0xff]  ;;  %v171_v12 = vld [vmem:[#allocation8] sm:$0xff]  ;;  %v172_v13 = vld [vmem:[#allocation8 + $0x8] sm:$0xff]  ;;  %v546_v20 = vpack.c.bf16 %v78_v10, %v77_v9 }
  0x3a   :  { %537 = vmatpush3.bf16.msra.mxu0 %v534_v3  ;;  %489 = vmatprep.mubr.f32.mxu0 %v69_v11  ;;  %v173_v14 = vld [vmem:[#allocation8 + $0x10] sm:$0xff]  ;;  %v566_v15 = vpack.c.bf16 %v172_v13, %v171_v12  ;;  %v174_v16 = vld [vmem:[#allocation8 + $0x18] sm:$0xff]  ;;  %v175_v18 = vld [vmem:[#allocation8 + $0x20] sm:$0xff]  ;;  %v345_v6 = vand.u32 127, %v344_v4 }
  0x3b   :  { %539 = vmatprep.subr.bf16.mxu0 %v538_v5  ;;  %v570_v17 = vpack.c.bf16 %v174_v16, %v173_v14  ;;  %v176_v19 = vld [vmem:[#allocation8 + $0x28] sm:$0xff]  ;;  %v79_v21 = vld [vmem:[#allocation6 + $0x40] sm:$0xff]  ;;  %v177_v24 = vld [vmem:[#allocation8 + $0x30] sm:$0xff] }
  0x3c   :  { %567 = vmatprep.subr.bf16.mxu1 %v566_v15  ;;  %v80_v22 = vld [vmem:[#allocation6 + $0x48] sm:$0xff]  ;;  %v574_v23 = vpack.c.bf16 %v176_v19, %v175_v18  ;;  %v178_v25 = vld [vmem:[#allocation8 + $0x38] sm:$0xff]  ;;  %v81_v27 = vld [vmem:[#allocation6 + $0x50] sm:$0xff]  ;;  %vm350_vm1 = vcmp.lt.s32.totalorder %v345_v6, 4  ;;  %vm349_vm4 = vcmp.lt.s32.totalorder %v345_v6, 12  ;;  %vm392_vm9 = vcmp.eq.s32.totalorder %v345_v6, 1 }
  0x3d   :  { %569 = vmatpush3.bf16.msra.mxu1 %v566_v15  ;;  %v550_v26 = vpack.c.bf16 %v80_v22, %v79_v21  ;;  %v82_v28 = vld [vmem:[#allocation6 + $0x58] sm:$0xff]  ;;  %v578_v29 = vpack.c.bf16 %v178_v25, %v177_v24  ;;  %v179_v30 = vld [vmem:[#allocation8 + $0x40] sm:$0xff]  ;;  %v180_v31 = vld [vmem:[#allocation8 + $0x48] sm:$0xff]  ;;  %vm391_vm10 = vcmp.eq.s32.totalorder %v345_v6, 0 }
  0x3e   :  { %541 = vmatpush3.bf16.msra.mxu0 %v538_v5  ;;  %571 = vmatprep.subr.bf16.mxu1 %v570_v17  ;;  %v554_v32 = vpack.c.bf16 %v82_v28, %v81_v27  ;;  %v83_v33 = vld [vmem:[#allocation6 + $0x60] sm:$0xff]  ;;  %v84_v34 = vld [vmem:[#allocation6 + $0x68] sm:$0xff]  ;;  %v582_v35 = vpack.c.bf16 %v180_v31, %v179_v30  ;;  %v181_v36 = vld [vmem:[#allocation8 + $0x50] sm:$0xff]  ;;  %v273_v5 = vstv %s845_s6  ;;  %s722_s6 = smov [#allocation9]  }
  0x3f   :  { %543 = vmatprep.subr.bf16.mxu0 %v542_v8  ;;  %v182_v37 = vld [vmem:[#allocation8 + $0x58] sm:$0xff]  ;;  %v558_v38 = vpack.c.bf16 %v84_v34, %v83_v33  ;;  %v85_v39 = vld [vmem:[#allocation6 + $0x70] sm:$0xff]  ;;  %v183_v42 = vld [vmem:[#allocation8 + $0x60] sm:$0xff]  ;;  %s406_s20 = sshll.u32 %s722_s6, 4  ;;  %s407_s20 = int_to_ptr.vmem [resolvable:$true] %s406_s20 }
  0x40   :  { %v86_v40 = vld [vmem:[#allocation6 + $0x78] sm:$0xff]  ;;  %v586_v41 = vpack.c.bf16 %v182_v37, %v181_v36  ;;  %v184_v43 = vld [vmem:[#allocation8 + $0x68] sm:$0xff]  ;;  %v185_v47 = vld [vmem:[#allocation8 + $0x70] sm:$0xff]  ;;  %s685_s21 = scalar_lea.vmem %s407_s20, 128  ;;  %p690_p11 = scmp.lt.s32.totalorder %s407_s20, %s407_s20 }
  0x41   :  { %573 = vmatpush3.bf16.msra.mxu1 %v570_v17  ;;  %v562_v44 = vpack.c.bf16 %v86_v40, %v85_v39  ;;  %v590_v45 = vpack.c.bf16 %v184_v43, %v183_v42  ;;  %v70_v46 = vld [vmem:[#allocation3 + $0x8] sm:$0xff]  ;;  %v416_v50 = vld [vmem:[%s841_s2] ss:$0 sm:$0xff]  ;;  %v390_v39 = vshrl.u32 %v344_v4, 7  ;;  %p686_p10 = scmp.ne.s32.totalorder %s407_s20, %s685_s21  ;;  %p691_p12 = scmp.lt.s32.totalorder %s685_s21, %s685_s21 }
  0x42   :  { %545 = vmatpush3.bf16.msra.mxu0 %v542_v8  ;;  %575 = vmatprep.subr.bf16.mxu1 %v574_v23  ;;  %v186_v48 = vld [vmem:[#allocation8 + $0x78] sm:$0xff]  ;;  %v417_v59 = vld [vmem:[%s843_s4] ss:$0 sm:$0xff] }
  0x43   :  { %547 = vmatprep.subr.bf16.mxu0 %v546_v20  ;;  %v594_v49 = vpack.c.bf16 %v186_v48, %v185_v47  ;;  %v271_v3 = vld [vmem:[%s844_s5] sm:$0x1]  ;;  %vm397_vm11 = vcmp.eq.s32.totalorder %v390_v39, 0  ;;  %p692_p13 = por %p691_p12, %p690_p11 }
  0x45   :  { %577 = vmatpush3.bf16.msra.mxu1 %v574_v23  ;;  %p693_p0 = pnand %p692_p13, %p686_p10 }
  0x46   :  { %549 = vmatpush3.bf16.msra.mxu0 %v546_v20  ;;  %579 = vmatprep.subr.bf16.mxu1 %v578_v29 }
  0x47   :  { %551 = vmatprep.subr.bf16.mxu0 %v550_v26 }
  0x49   :  { %581 = vmatpush3.bf16.msra.mxu1 %v578_v29 }
  0x4a   :  { %553 = vmatpush3.bf16.msra.mxu0 %v550_v26  ;;  %583 = vmatprep.subr.bf16.mxu1 %v582_v35 }
  0x4b   :  { %555 = vmatprep.subr.bf16.mxu0 %v554_v32 }
  0x4d   :  { %585 = vmatpush3.bf16.msra.mxu1 %v582_v35 }
  0x4e   :  { %557 = vmatpush3.bf16.msra.mxu0 %v554_v32  ;;  %587 = vmatprep.subr.bf16.mxu1 %v586_v41 }
  0x4f   :  { %559 = vmatprep.subr.bf16.mxu0 %v558_v38 }
  0x51   :  { %589 = vmatpush3.bf16.msra.mxu1 %v586_v41 }
  0x52   :  { %561 = vmatpush3.bf16.msra.mxu0 %v558_v38  ;;  %591 = vmatprep.subr.bf16.mxu1 %v590_v45 }
  0x53   :  { %563 = vmatprep.subr.bf16.mxu0 %v562_v44 }
  0x55   :  { %593 = vmatpush3.bf16.msra.mxu1 %v590_v45 }
  0x56   :  { %565 = vmatpush3.bf16.msra.mxu0 %v562_v44  ;;  %595 = vmatprep.subr.bf16.mxu1 %v594_v49 }
  0x57   :  { %598 = vmatprep.subr.bf16.mxu0 %v718_v57 }
  0x59   :  { %490 = vmatmul.mubr.f32.vlgmr.msra.gmra.mrb[0].mxu0 %v70_v46  ;;  %597 = vmatpush3.bf16.msra.mxu1 %v594_v49 }
  0x5a   :  { %531 = vmatprep.mubr.msk.f32.mxu0 %vm719_vm0, %v720_v58 }
 0x12c   :  { %v491_v51 = vpop.f32.mrb[0].mxu0 }
 0x12d   :  { %v166_v52 = vadd.f32 %v491_v51, %v416_v50  ;;  %v160_v53 = vpop.f32.mrb[1].mxu0 }
 0x12e   :  { %v161_v54 = vadd.f32 %v416_v50, %v160_v53 }
 0x12f   :  { %v170_v56 = vmax.f32 %v166_v52, 0.0 }
 0x130   :  { %v169_v55 = vmax.f32 %v161_v54, 0.0 }
 0x132   :  { %524 = vmatprep.mubr.f32.mxu1 %v169_v55 }
 0x133   :  { %525 = vmatmul.mubr.f32.vlgmr.msra.gmra.mrb[0].mxu1 %v170_v56 }
 0x206   :  { %v526_v60 = vpop.f32.mrb[0].mxu1 }
 0x207   :  { %v266_v61 = vadd.f32 %v526_v60, %v417_v59  ;;  %v260_v62 = vpop.f32.mrb[1].mxu1 }
 0x208   :  { %v261_v63 = vadd.f32 %v417_v59, %v260_v62 }
 0x209   :  { %v270_v0 = vmax.f32 %v266_v61, 0.0 }
 0x20a   :  { %v269_v1 = vmax.f32 %v261_v63, 0.0 }
 0x20c   :  { %v599_v2 = vpack.c.bf16 %v270_v0, %v269_v1 }
 0x20e   :  { %600 = vmatpush3.bf16.xpose.msra.mxu0 %v599_v2 }
 0x215   :  { %532 = vmatmul.mubr.f32.vlgmr.msra.gmra.mrb[2].mxu0 %v271_v3 }
 0x2e8   :  { %v340_v7 = vpop.f32.mrb[2].mxu0 }
 0x2e9   :  { %v341_v8 = vadd.f32 %v340_v7, %v273_v5  ;;  %v533_v9 = vpop.f32.mrb[3].mxu0 }
 0x2eb   :  { %v351_v10 = vsub.f32 0.0, %v341_v8  ;;  %vm362_vm2 = vcmp.gt.f32.partialorder %v341_v8, 0.0 }
 0x2ec   :  { %vm363_vm3 = vmxor %vm362_vm2, %vm350_vm1 }
 0x2ed   :  { %v352_v11 = vsel %vm350_vm1, %v351_v10, %v341_v8  ;;  %vm364_vm6 = vmxor %vm363_vm3, %vm721_vm5 }
 0x2ee   :  { %v354_v12 = vand.u32 2147483647, %v352_v11  ;;  %v353_v18 = vmax.f32 %v352_v11, 0.0  ;;  %vm377_vm7 = vmand %vm349_vm4, %vm364_vm6 }
 0x2ef   :  { %v378_v23 = vsel %vm377_vm7, 1.0, %v720_v58 }
 0x2f0   :  { %v355_v13 = vsub.f32 0.0, %v354_v12  ;;  %v379_v24 = vsel %vm366_vm8, %v378_v23, 0.0 }
 0x2f2   :  { %v356_v14 = vmul.f32 1.442695, %v355_v13 }
 0x2f4   :  { %615 = vpow2.f32 %v356_v14 }
 0x2fe   :  { %v616_v15 = vpop.eup %615 }
 0x2ff   :  { %v358_v16 = vadd.f32 1.0, %v616_v15 }
 0x301   :  { %617 = vlog2.f32 %v358_v16 }
 0x30b   :  { %v618_v17 = vpop.eup %617 }
 0x30c   :  { %v360_v19 = vmul.f32 0.6931472, %v618_v17 }
 0x30e   :  { %v361_v20 = vadd.f32 %v360_v19, %v353_v18 }
 0x310   :  { %v365_v21 = vsel %vm349_vm4, %v361_v20, 0.0 }
 0x311   :  { %v367_v22 = vsel %vm366_vm8, %v365_v21, 0.0 }
 0x312   :  { %368 = vadd.xlane.f32.xlu0 %v367_v22 }
 0x316   :  { %380 = vadd.xlane.f32.xlu0 %v379_v24 }
 0x39f   :  { %v369_v25 = vpop.xlane.xlu0 %368 }
 0x3a0   :  { %v370_v26 = vrot.slane %v369_v25, 4 }
 0x3a2   :  { %v371_v27 = vadd.f32 %v370_v26, %v369_v25 }
 0x3a3   :  { %v381_v28 = vpop.xlane.xlu0 %380 }
 0x3a4   :  { %v372_v29 = vrot.slane %v371_v27, 2  ;;  %v382_v30 = vrot.slane %v381_v28, 4 }
 0x3a6   :  { %v383_v31 = vadd.f32 %v382_v30, %v381_v28  ;;  %v373_v32 = vadd.f32 %v372_v29, %v371_v27 }
 0x3a8   :  { %v384_v33 = vrot.slane %v383_v31, 2  ;;  %v374_v34 = vrot.slane %v373_v32, 1 }
 0x3aa   :  { %v385_v35 = vadd.f32 %v384_v33, %v383_v31  ;;  %v375_v36 = vadd.f32 %v374_v34, %v373_v32 }
 0x3ac   :  { %601 = vpush %v375_v36  ;;  %v386_v37 = vrot.slane %v385_v35, 1 }
 0x3ae   :  { %v387_v38 = vadd.f32 %v386_v37, %v385_v35 }
 0x3b0   :  { %603 = vpush %v387_v38 }
 0x3dd   :  { %s602_s4 = spop %601 }
 0x3de   :  { %v395_v41 = vstv %s602_s4 }
 0x3e1   :  { %s604_s5 = spop %603 }
 0x3e2   :  { %v393_v40 = vstv %s604_s5 }
 0x3e3   :  { %v394_v42 = vsel %vm392_vm9, %v393_v40, 0.0 }
 0x3e4   :  { %v396_v43 = vsel %vm391_vm10, %v395_v41, %v394_v42 }
 0x3e5   :  { %v398_v44 = vsel %vm397_vm11, %v396_v43, 0.0 }
 0x3e6   :  { %399 = vst [vmem:[#allocation9] sm:$0xff] %v398_v44 }
 0x3e7   :  { %696 = shalt.err (!%p693_p0)
}
 0x3e8   :  { %s697_s24 = scalar_lea.hbm %s846_s7, 128 }
 0x3e9   :  { %p698_p1 = scmp.ne.s32.totalorder %s846_s7, %s697_s24  ;;  %p701_p2 = scmp.lt.u32.totalorder %s697_s24, %s846_s7 }
 0x3eb   :  { %p703_p3 = pnand %p701_p2, %p698_p1 }
 0x3ed   :  { %706 = shalt.err (!%p703_p3)
}
 0x3ee   :  { %409 = dma.vmem_to_hbm [thread:$0]  %s407_s20, 128, %s846_s7, [#allocation5]  }
 0x3ef   :  { %711 = dma.done.wait [#allocation5], 128  }
 0x3f0   :  { %712 = vsyncadd [#allocation5], 4294967168 }
 0x3f1   :  { %413 = vsyncpa [#allocation4], 1 }
 0x3f2   :  { %414 = vsyncpa [#allocation7], 1 }
 0x3f3   :  { %415 = vsyncpa [#allocation5], 1 }

</bundles_post_ra>
